<compile_context>
chip_gen: v7x
topology: tpu7x:2x2x1
jax: 0.10.0
libtpu: 0.0.40
codegen_flags: <defaults>
</compile_context>

<pallas_src>
import functools

import jax
import jax.numpy as jnp
from jax.experimental import pallas as pl
from jax.experimental.pallas import tpu as pltpu


def _round_up(x, m):
    return ((x + m - 1) // m) * m


def _has_bf16_vpu():
    """bf16 elementwise (VALU/EUP) is native on v6e/v7x; v5e & older would
    upcast-op-downcast, so keep f32 there."""
    try:
        kind = jax.devices()[0].device_kind.lower()
    except Exception:
        return False
    return ("v6" in kind) or ("v7" in kind)


def link_predictor_kernel(xi_ref, xj_ref,
                          w0_ref, b0_ref,
                          w1_ref, b1_ref,
                          w2_ref, b2_ref,
                          out_ref, *, ew_dtype, lane_dense_out):
    f32 = jnp.float32

    # Pairwise interaction.  Inputs stream in as f32; on v6e/v7x the product
    # runs half-width in bf16 (bf16 VALU), on v5e it stays in f32.
    x = (xi_ref[...].astype(ew_dtype) * xj_ref[...].astype(ew_dtype)
         ).astype(jnp.bfloat16)

    # layer 0: Linear(in -> hidden) + ReLU   (bf16 MXU operands, f32 accumulate)
    h = jnp.dot(x, w0_ref[...], preferred_element_type=f32)
    h = jnp.maximum(h.astype(ew_dtype) + b0_ref[...], 0).astype(jnp.bfloat16)

    # layer 1: Linear(hidden -> hidden) + ReLU
    h = jnp.dot(h, w1_ref[...], preferred_element_type=f32)
    h = jnp.maximum(h.astype(ew_dtype) + b1_ref[...], 0).astype(jnp.bfloat16)

    # final layer + sigmoid
    if lane_dense_out:
        # hid -> 1, but contracted on the MXU as (8, hid) x (tile_n, hid)^T so
        # the result comes out as a lane-dense row.  w2 is replicated across 8
        # sublane rows (free: the MXU computes 8 LHS rows per pass anyway), and
        # we keep row 0.  No (tile_n, 1) column ever materializes.
        o = jnp.einsum('ok,nk->on', w2_ref[...], h,
                       preferred_element_type=f32)[0:1, :]      # (1, tile_n)
        o = o + b2_ref[...]                                     # lane-broadcast bias
        # sigmoid = 1 / (1 + exp(-o)): exp and the divide both go to the EUP.
        sig = pl.reciprocal(1.0 + jnp.exp(-o), approx=True)
        out_ref[...] = sig.reshape(out_ref.shape).astype(out_ref.dtype)
    else:
        o = jnp.dot(h, w2_ref[...], preferred_element_type=f32) + b2_ref[...]
        out_ref[...] = jax.nn.sigmoid(o).astype(out_ref.dtype)


def link_predictor(x_i, x_j, params, *, tile_n=2048, ew_dtype=None):
    """params = ((w0, b0), (w1, b1), (w2, b2)); weights stored as [in, out]."""
    (w0, b0), (w1, b1), (w2, b2) = params
    N, in_c = x_i.shape
    hid = w0.shape[1]
    out_c = w2.shape[1]
    f32 = jnp.float32

    if ew_dtype is None:
        ew_dtype = jnp.bfloat16 if _has_bf16_vpu() else f32

    # ---- tile sizing ---------------------------------------------------------
    # Big tiles amortize the ~0.35us per-grid-step overhead; clamp so the grid
    # keeps >=4 steps when N is large enough (v7x's two TensorCores share the
    # "parallel" axis).  Multiple of 128 keeps the lane-dense output rows and
    # sublane packing clean.  (If pushing tile_n >= 8192 on v5e, set
    # vmem_limit_bytes explicitly — not needed at the 2048 default.)
    tile_n = int(tile_n)
    tile_n = min(tile_n, _round_up(pl.cdiv(N, 4), 128))
    tile_n = max(128, tile_n)
    grid_n = pl.cdiv(N, tile_n)

    # ---- dtype / layout plumbing --------------------------------------------
    # Inputs stream as f32 (no wrapper-side bf16 pre-cast => no extra HBM pass);
    # the bf16 cast for the MXU happens inside the kernel.
    xi = x_i.astype(f32)
    xj = x_j.astype(f32)

    w0b = w0.astype(jnp.bfloat16)
    w1b = w1.astype(jnp.bfloat16)
    b0r = b0.reshape(1, hid).astype(ew_dtype)
    b1r = b1.reshape(1, hid).astype(ew_dtype)

    lane_dense = (out_c == 1)
    if lane_dense:
        # w2 as a transposed row, replicated over the 8 MXU sublane rows.
        w2k = jnp.tile(w2.reshape(1, hid).astype(jnp.bfloat16), (8, 1))
        b2r = b2.reshape(1, 1).astype(f32)
        # Lane-dense output: one (1, 1, tile_n) f32 row per grid step.
        out_shape = jax.ShapeDtypeStruct((grid_n, 1, tile_n), f32)
        out_spec = pl.BlockSpec((1, 1, tile_n), lambda i: (i, 0, 0))
    else:
        w2k = w2.astype(jnp.bfloat16)
        b2r = b2.reshape(1, out_c).astype(f32)
        out_shape = jax.ShapeDtypeStruct((N, out_c), f32)
        out_spec = pl.BlockSpec((tile_n, out_c), lambda i: (i, 0))

    act_spec = pl.BlockSpec((tile_n, in_c), lambda i: (i, 0))

    def full(shp):
        return pl.BlockSpec(shp, lambda i: tuple(0 for _ in shp))

    # ---- advisory cost estimate for XLA scheduling ---------------------------
    flops = 2 * N * (in_c * hid + hid * hid + hid * out_c) + 5 * N * hid
    bytes_accessed = (2 * N * in_c * 4 + N * out_c * 4
                      + 2 * (w0b.size + w1b.size + w2k.size)
                      + 4 * (b0r.size + b1r.size + b2r.size))
    cost = pl.CostEstimate(flops=int(flops),
                           transcendentals=int(2 * N * out_c),
                           bytes_accessed=int(bytes_accessed))

    kernel = functools.partial(link_predictor_kernel,
                               ew_dtype=ew_dtype,
                               lane_dense_out=lane_dense)

    out = pl.pallas_call(
        kernel,
        out_shape=out_shape,
        grid_spec=pltpu.PrefetchScalarGridSpec(
            num_scalar_prefetch=0,
            grid=(grid_n,),
            in_specs=[
                act_spec,                 # x_i tile (f32, streamed)
                act_spec,                 # x_j tile (f32, streamed)
                full((in_c, hid)),        # w0 (bf16, VMEM-resident)
                full((1, hid)),           # b0
                full((hid, hid)),         # w1 (bf16, VMEM-resident)
                full((1, hid)),           # b1
                full(tuple(w2k.shape)),   # w2 (replicated row / matrix)
                full(tuple(b2r.shape)),   # b2
            ],
            out_specs=out_spec,
        ),
        compiler_params=pltpu.CompilerParams(
            dimension_semantics=("parallel",)),
        cost_estimate=cost,
    )(xi, xj, w0b, b0r, w1b, b1r, w2k, b2r)

    if lane_dense:
        # (grid_n, 1, tile_n) row-major == results in row order; drop the
        # padded tail produced by the partial last block.
        return out.reshape(-1)[:N].reshape(N, out_c)
    return out


def init_params(key, in_channels, hidden_channels, out_channels, num_layers):
    """Deterministic PyTorch-Linear-style init (uniform +-1/sqrt(fan_in)).
    Weights returned pre-transposed to [in, out]."""
    dims = [in_channels] + [hidden_channels] * (num_layers - 1) + [out_channels]
    params = []
    for li in range(num_layers):
        fan_in, fan_out = dims[li], dims[li + 1]
        key, kw, kb = jax.random.split(key, 3)
        bound = 1.0 / jnp.sqrt(fan_in)
        w = jax.random.uniform(kw, (fan_in, fan_out), jnp.float32, -bound, bound)
        b = jax.random.uniform(kb, (fan_out,), jnp.float32, -bound, bound)
        params.append((w, b))
    return tuple(params)


def reference_forward(x_i, x_j, params):
    x = x_i * x_j
    for w, b in params[:-1]:
        x = jnp.maximum(x @ w + b, 0.0)
    w, b = params[-1]
    return jax.nn.sigmoid(x @ w + b)


if __name__ == "__main__":
    in_channels = 32
    hidden_channels = 64
    out_channels = 1
    num_layers = 3
    dropout = 0.5          # eval mode -> identity

    key = jax.random.PRNGKey(0)
    key, kp = jax.random.split(key)
    params = init_params(kp, in_channels, hidden_channels, out_channels, num_layers)

    # Case 1: small batch (single 128-row tile; partial block handled by Pallas).
    N = 16
    key, ki, kj = jax.random.split(key, 3)
    x_i = jax.random.normal(ki, (N, in_channels), jnp.float32)
    x_j = jax.random.normal(kj, (N, in_channels), jnp.float32)

    out = jax.block_until_ready(link_predictor(x_i, x_j, params))
    ref = reference_forward(x_i, x_j, params)
    assert out.shape == (N, out_channels)
    # bf16 MXU operands (+ bf16 elementwise on v6e/v7x) -> relaxed tolerance.
    assert jnp.allclose(out, ref, atol=2e-2, rtol=2e-2), "mismatch vs JAX reference (small N)"

    # Case 2: larger batch, NOT a multiple of the tile size (exercises the
    # partial last block and a multi-step parallel grid).
    N2 = 1000
    key, ki2, kj2 = jax.random.split(key, 3)
    x_i2 = jax.random.normal(ki2, (N2, in_channels), jnp.float32)
    x_j2 = jax.random.normal(kj2, (N2, in_channels), jnp.float32)

    out2 = jax.block_until_ready(link_predictor(x_i2, x_j2, params))
    ref2 = reference_forward(x_i2, x_j2, params)
    assert out2.shape == (N2, out_channels)
    assert jnp.allclose(out2, ref2, atol=2e-2, rtol=2e-2), "mismatch vs JAX reference (large N)"

    print("KERNEL_OK")
</pallas_src>

<mosaic_0001>
module attributes {stable_mosaic.version = 11 : i64} {
  func.func @link_predictor_kernel(%arg0: i32, %arg1: memref<128x32xf32, #tpu.memory_space<vmem>>, %arg2: memref<128x32xf32, #tpu.memory_space<vmem>>, %arg3: memref<32x64xbf16, #tpu.memory_space<vmem>>, %arg4: memref<1x64xf32, #tpu.memory_space<vmem>>, %arg5: memref<64x64xbf16, #tpu.memory_space<vmem>>, %arg6: memref<1x64xf32, #tpu.memory_space<vmem>>, %arg7: memref<8x64xbf16, #tpu.memory_space<vmem>>, %arg8: memref<1x1xf32, #tpu.memory_space<vmem>>, %arg9: memref<1x1x128xf32, #tpu.memory_space<vmem>>) attributes {dimension_semantics = [#tpu.dimension_semantics<parallel>], iteration_bounds = array<i64: 1>, scalar_prefetch = 0 : i64, scratch_operands = 0 : i64, tpu.core_type = #tpu.core_type<tc>, window_params = [{transform_indices = @transform_0, window_bounds = array<i64: 128, 32>}, {transform_indices = @transform_1, window_bounds = array<i64: 128, 32>}, {pipeline_mode = #tpu.pipeline_mode<synchronous>, transform_indices = @transform_2, window_bounds = array<i64: 32, 64>}, {pipeline_mode = #tpu.pipeline_mode<synchronous>, transform_indices = @transform_3, window_bounds = array<i64: 1, 64>}, {pipeline_mode = #tpu.pipeline_mode<synchronous>, transform_indices = @transform_4, window_bounds = array<i64: 64, 64>}, {pipeline_mode = #tpu.pipeline_mode<synchronous>, transform_indices = @transform_5, window_bounds = array<i64: 1, 64>}, {pipeline_mode = #tpu.pipeline_mode<synchronous>, transform_indices = @transform_6, window_bounds = array<i64: 8, 64>}, {pipeline_mode = #tpu.pipeline_mode<synchronous>, transform_indices = @transform_7, window_bounds = array<i64: 1, 1>}, {transform_indices = @transform_8, window_bounds = array<i64: 1, 1, 128>}]} {
    %c0 = arith.constant 0 : index
    %c0_0 = arith.constant 0 : index
    %0 = vector.load %arg1[%c0, %c0_0] : memref<128x32xf32, #tpu.memory_space<vmem>>, vector<128x32xf32>
    %c0_1 = arith.constant 0 : index
    %c0_2 = arith.constant 0 : index
    %1 = vector.load %arg2[%c0_1, %c0_2] : memref<128x32xf32, #tpu.memory_space<vmem>>, vector<128x32xf32>
    %2 = arith.mulf %0, %1 : vector<128x32xf32>
    %3 = arith.truncf %2 : vector<128x32xf32> to vector<128x32xbf16>
    %c0_3 = arith.constant 0 : index
    %c0_4 = arith.constant 0 : index
    %4 = vector.load %arg3[%c0_3, %c0_4] : memref<32x64xbf16, #tpu.memory_space<vmem>>, vector<32x64xbf16>
    %cst = arith.constant dense<0.000000e+00> : vector<128x64xf32>
    %5 = tpu.matmul %3, %4, %cst {dimension_numbers = #tpu.dot_dimension_numbers<[1], [0], [0], [1], [0, 0, 1, 1], [], []>} : vector<128x32xbf16>, vector<32x64xbf16>, vector<128x64xf32> -> vector<128x64xf32>
    %c0_5 = arith.constant 0 : index
    %c0_6 = arith.constant 0 : index
    %6 = vector.load %arg4[%c0_5, %c0_6] : memref<1x64xf32, #tpu.memory_space<vmem>>, vector<1x64xf32>
    %7 = vector.broadcast %6 : vector<1x64xf32> to vector<128x64xf32>
    %8 = arith.addf %5, %7 : vector<128x64xf32>
    %cst_7 = arith.constant 0.000000e+00 : f32
    %9 = vector.broadcast %cst_7 : f32 to vector<128x64xf32>
    %10 = arith.maximumf %8, %9 : vector<128x64xf32>
    %11 = arith.truncf %10 : vector<128x64xf32> to vector<128x64xbf16>
    %c0_8 = arith.constant 0 : index
    %c0_9 = arith.constant 0 : index
    %12 = vector.load %arg5[%c0_8, %c0_9] : memref<64x64xbf16, #tpu.memory_space<vmem>>, vector<64x64xbf16>
    %cst_10 = arith.constant dense<0.000000e+00> : vector<128x64xf32>
    %13 = tpu.matmul %11, %12, %cst_10 {dimension_numbers = #tpu.dot_dimension_numbers<[1], [0], [0], [1], [0, 0, 1, 1], [], []>} : vector<128x64xbf16>, vector<64x64xbf16>, vector<128x64xf32> -> vector<128x64xf32>
    %c0_11 = arith.constant 0 : index
    %c0_12 = arith.constant 0 : index
    %14 = vector.load %arg6[%c0_11, %c0_12] : memref<1x64xf32, #tpu.memory_space<vmem>>, vector<1x64xf32>
    %15 = vector.broadcast %14 : vector<1x64xf32> to vector<128x64xf32>
    %16 = arith.addf %13, %15 : vector<128x64xf32>
    %cst_13 = arith.constant 0.000000e+00 : f32
    %17 = vector.broadcast %cst_13 : f32 to vector<128x64xf32>
    %18 = arith.maximumf %16, %17 : vector<128x64xf32>
    %19 = arith.truncf %18 : vector<128x64xf32> to vector<128x64xbf16>
    %c0_14 = arith.constant 0 : index
    %c0_15 = arith.constant 0 : index
    %20 = vector.load %arg7[%c0_14, %c0_15] : memref<8x64xbf16, #tpu.memory_space<vmem>>, vector<8x64xbf16>
    "tpu.trace_start"() <{level = 10 : i32, message = "ok,nk->on"}> : () -> ()
    %cst_16 = arith.constant dense<0.000000e+00> : vector<8x128xf32>
    %21 = tpu.matmul %20, %19, %cst_16 {dimension_numbers = #tpu.dot_dimension_numbers<[1], [1], [0], [0], [0, 0, 1, 0], [], []>} : vector<8x64xbf16>, vector<128x64xbf16>, vector<8x128xf32> -> vector<8x128xf32>
    "tpu.trace_stop"() : () -> ()
    %22 = vector.extract_strided_slice %21 {offsets = [0, 0], sizes = [1, 128], strides = [1, 1]} : vector<8x128xf32> to vector<1x128xf32>
    %c0_17 = arith.constant 0 : index
    %c0_18 = arith.constant 0 : index
    %23 = vector.load %arg8[%c0_17, %c0_18] : memref<1x1xf32, #tpu.memory_space<vmem>>, vector<1x1xf32>
    %24 = vector.broadcast %23 : vector<1x1xf32> to vector<1x128xf32>
    %25 = arith.addf %22, %24 : vector<1x128xf32>
    %cst_19 = arith.constant 0.000000e+00 : f32
    %26 = vector.broadcast %cst_19 : f32 to vector<1x128xf32>
    %27 = arith.subf %26, %25 : vector<1x128xf32>
    %28 = math.exp %27 : vector<1x128xf32>
    %cst_20 = arith.constant 1.000000e+00 : f32
    %29 = vector.broadcast %cst_20 : f32 to vector<1x128xf32>
    %30 = arith.addf %29, %28 : vector<1x128xf32>
    %31 = tpu.reciprocal %30 {approx = true} : vector<1x128xf32> -> vector<1x128xf32>
    %32 = vector.shape_cast %31 : vector<1x128xf32> to vector<1x1x128xf32>
    %c0_21 = arith.constant 0 : index
    %c0_22 = arith.constant 0 : index
    %c0_23 = arith.constant 0 : index
    %33 = vector.load %arg9[%c0_21, %c0_22, %c0_23] : memref<1x1x128xf32, #tpu.memory_space<vmem>>, vector<1x1x128xf32>
    tpu.vector_store %arg9[%c0_21, %c0_22, %c0_23], %32 {strides = array<i32>} : memref<1x1x128xf32, #tpu.memory_space<vmem>>, vector<1x1x128xf32>,
    return
  }
  func.func @transform_0(%arg0: i32) -> (i32, i32) {
    %c0_i32 = arith.constant 0 : i32
    %c0_i32_0 = arith.constant 0 : i32
    return %arg0, %c0_i32 : i32, i32
  }
  func.func @transform_1(%arg0: i32) -> (i32, i32) {
    %c0_i32 = arith.constant 0 : i32
    %c0_i32_0 = arith.constant 0 : i32
    return %arg0, %c0_i32 : i32, i32
  }
  func.func @transform_2(%arg0: i32) -> (i32, i32) {
    %c0_i32 = arith.constant 0 : i32
    %c0_i32_0 = arith.constant 0 : i32
    %c0_i32_1 = arith.constant 0 : i32
    return %c0_i32, %c0_i32_0 : i32, i32
  }
  func.func @transform_3(%arg0: i32) -> (i32, i32) {
    %c0_i32 = arith.constant 0 : i32
    %c0_i32_0 = arith.constant 0 : i32
    %c0_i32_1 = arith.constant 0 : i32
    return %c0_i32, %c0_i32_0 : i32, i32
  }
  func.func @transform_4(%arg0: i32) -> (i32, i32) {
    %c0_i32 = arith.constant 0 : i32
    %c0_i32_0 = arith.constant 0 : i32
    %c0_i32_1 = arith.constant 0 : i32
    return %c0_i32, %c0_i32_0 : i32, i32
  }
  func.func @transform_5(%arg0: i32) -> (i32, i32) {
    %c0_i32 = arith.constant 0 : i32
    %c0_i32_0 = arith.constant 0 : i32
    %c0_i32_1 = arith.constant 0 : i32
    return %c0_i32, %c0_i32_0 : i32, i32
  }
  func.func @transform_6(%arg0: i32) -> (i32, i32) {
    %c0_i32 = arith.constant 0 : i32
    %c0_i32_0 = arith.constant 0 : i32
    %c0_i32_1 = arith.constant 0 : i32
    return %c0_i32, %c0_i32_0 : i32, i32
  }
  func.func @transform_7(%arg0: i32) -> (i32, i32) {
    %c0_i32 = arith.constant 0 : i32
    %c0_i32_0 = arith.constant 0 : i32
    %c0_i32_1 = arith.constant 0 : i32
    return %c0_i32, %c0_i32_0 : i32, i32
  }
  func.func @transform_8(%arg0: i32) -> (i32, i32, i32) {
    %c0_i32 = arith.constant 0 : i32
    %c0_i32_0 = arith.constant 0 : i32
    %c0_i32_1 = arith.constant 0 : i32
    return %arg0, %c0_i32, %c0_i32_0 : i32, i32, i32
  }
}

</mosaic_0001>

<bundles_post_ra>
// kernel: tpu_custom_call.1
= control target key start
LH: loop header
LB: loop body
LE: loop exit
PB: predicated region body
PF: predicated region fallthrough
CT: control target
= control target key end

     0   :  { %s1031_s0 = inlined_call_operand.hbm [shape: f32[16,32], index: 0, kind: input, shape index: {}]   ;;  %s1032_s1 = inlined_call_operand.hbm [shape: f32[16,32], index: 1, kind: input, shape index: {}]   ;;  %s1033_s2 = inlined_call_operand.hbm [shape: bf16[32,64], index: 2, kind: input, shape index: {}]   ;;  %s1034_s3 = inlined_call_operand.vmem [shape: f32[1,64], index: 3, kind: input, shape index: {}]   ;;  %s1035_s4 = inlined_call_operand.hbm [shape: bf16[64,64], index: 4, kind: input, shape index: {}]   ;;  %s1036_s5 = inlined_call_operand.vmem [shape: f32[1,64], index: 5, kind: input, shape index: {}]   ;;  %s1037_s6 = inlined_call_operand.vmem [shape: bf16[8,64], index: 6, kind: input, shape index: {}]   ;;  %s1038_s7 = inlined_call_operand.<no memory space> [shape: f32[1,1], index: 7, kind: input, shape index: {}]   ;;  %s1039_s8 = inlined_call_operand.hbm [shape: f32[1,1,128], index: 8, kind: output, shape index: {}]  }
   0x1   :  { %v13_v0 = vstv %s1038_s7 }
   0x2   :  { %14 = vst [vmem:[#allocation2] sm:$0x1] %v13_v0 }
   0x3   :  { %15 = vsyncpa [#allocation4], 0 }
   0x4   :  { %16 = vsyncpa [#allocation7], 0 }
   0x5   :  { %17 = vsyncpa [#allocation10], 0 }
   0x6   :  { %18 = vsyncpa [#allocation5], 0 }
   0x7   :  { %23 = vsyncadd [#allocation4], 1792  ;;  %s861_s29 = smov [#allocation3]   ;;  %s743_s11 = scalar_lea.hbm %s1031_s0, 256 }
   0x8   :  { %s24_s30 = sshll.u32 %s861_s29, 4  ;;  %p744_p0 = scmp.ne.s32.totalorder %s1031_s0, %s743_s11  ;;  %s25_s30 = int_to_ptr.vmem [resolvable:$true] %s24_s30 }
   0x9   :  { %p747_p1 = scmp.lt.u32.totalorder %s743_s11, %s1031_s0 }
   0xb   :  { %p749_p2 = pnand %p747_p1, %p744_p0 }
   0xd   :  { %752 = shalt.err (!%p749_p2)
}
   0xe   :  { %s753_s7 = scalar_lea.vmem %s25_s30, 256  ;;  %s757_s16 = scalar_lea.vmem %s25_s30, 2048 }
   0xf   :  { %p754_p3 = scmp.ne.s32.totalorder %s25_s30, %s753_s7  ;;  %p758_p4 = scmp.lt.s32.totalorder %s25_s30, %s25_s30 }
  0x10   :  { %p759_p5 = scmp.lt.s32.totalorder %s757_s16, %s753_s7 }
  0x12   :  { %p760_p6 = por %p759_p5, %p758_p4 }
  0x14   :  { %p761_p7 = pnand %p760_p6, %p754_p3 }
  0x16   :  { %764 = shalt.err (!%p761_p7)
}
  0x17   :  { %s862_s17 = smov 128   ;;  %s863_s18 = smov 8  }
  0x18   :  { %30 = dma.hbm_to_vmem [thread:$0]  %s1031_s0, 256, %s25_s30, [#allocation4], %s862_s17, %s862_s17, %s863_s18  }
  0x19   :  { %35 = vsyncadd [#allocation7], 1792  ;;  %s864_s21 = smov [#allocation6]   ;;  %s865_s23 = smov [#allocation8]  }
  0x1a   :  { %s36_s22 = sshll.u32 %s864_s21, 4  ;;  %s48_s24 = sshll.u32 %s865_s23, 4  ;;  %s37_s22 = int_to_ptr.vmem [resolvable:$true] %s36_s22  ;;  %s933_s24 = int_to_ptr.vmem [resolvable:$true] %s48_s24 }
  0x1b   :  { %s765_s27 = scalar_lea.hbm %s1032_s1, 256 }
  0x1c   :  { %p766_p8 = scmp.ne.s32.totalorder %s1032_s1, %s765_s27  ;;  %p769_p9 = scmp.lt.u32.totalorder %s765_s27, %s1032_s1 }
  0x1e   :  { %p771_p10 = pnand %p769_p9, %p766_p8 }
  0x20   :  { %774 = shalt.err (!%p771_p10)
}
  0x21   :  { %s775_s0 = scalar_lea.vmem %s37_s22, 256  ;;  %s779_s30 = scalar_lea.vmem %s37_s22, 2048 }
  0x22   :  { %p776_p11 = scmp.ne.s32.totalorder %s37_s22, %s775_s0  ;;  %p780_p12 = scmp.lt.s32.totalorder %s37_s22, %s37_s22 }
  0x23   :  { %p781_p13 = scmp.lt.s32.totalorder %s779_s30, %s775_s0 }
  0x25   :  { %p782_p0 = por %p781_p13, %p780_p12 }
  0x27   :  { %p783_p1 = pnand %p782_p0, %p776_p11 }
  0x29   :  { %786 = shalt.err (!%p783_p1)
}
  0x2a   :  { %42 = dma.hbm_to_vmem [thread:$0]  %s1032_s1, 256, %s37_s22, [#allocation7], %s862_s17, %s862_s17, %s863_s18  }
  0x2b   :  { %s787_s15 = scalar_lea.hbm %s1033_s2, 256 }
  0x2c   :  { %p788_p2 = scmp.ne.s32.totalorder %s1033_s2, %s787_s15  ;;  %p791_p3 = scmp.lt.u32.totalorder %s787_s15, %s1033_s2 }
  0x2e   :  { %p793_p4 = pnand %p791_p3, %p788_p2 }
  0x30   :  { %796 = shalt.err (!%p793_p4)
}
  0x31   :  { %s797_s21 = scalar_lea.vmem %s933_s24, 256  ;;  %p802_p6 = scmp.lt.s32.totalorder %s933_s24, %s933_s24 }
  0x32   :  { %p798_p5 = scmp.ne.s32.totalorder %s933_s24, %s797_s21  ;;  %p803_p7 = scmp.lt.s32.totalorder %s797_s21, %s797_s21 }
  0x34   :  { %p804_p8 = por %p803_p7, %p802_p6 }
  0x36   :  { %p805_p9 = pnand %p804_p8, %p798_p5 }
  0x38   :  { %808 = shalt.err (!%p805_p9)
}
  0x39   :  { %s866_s1 = smov 64   ;;  %s867_s17 = smov 4  }
  0x3a   :  { %54 = dma.hbm_to_vmem [thread:$0]  %s1033_s2, 256, %s933_s24, [#allocation7], %s866_s1, %s866_s1, %s867_s17  }
  0x3b   :  { %s868_s23 = smov [#allocation9]   ;;  %s809_s28 = scalar_lea.hbm %s1035_s4, 512 }
  0x3c   :  { %s62_s25 = sshll.u32 %s868_s23, 4  ;;  %p810_p10 = scmp.ne.s32.totalorder %s1035_s4, %s809_s28  ;;  %s63_s25 = int_to_ptr.vmem [resolvable:$true] %s62_s25 }
  0x3d   :  { %p813_p11 = scmp.lt.u32.totalorder %s809_s28, %s1035_s4 }
  0x3f   :  { %p815_p12 = pnand %p813_p11, %p810_p10 }
  0x41   :  { %818 = shalt.err (!%p815_p12)
}
  0x42   :  { %s819_s30 = scalar_lea.vmem %s63_s25, 512  ;;  %p824_p0 = scmp.lt.s32.totalorder %s63_s25, %s63_s25 }
  0x43   :  { %p820_p13 = scmp.ne.s32.totalorder %s63_s25, %s819_s30  ;;  %p825_p1 = scmp.lt.s32.totalorder %s819_s30, %s819_s30 }
  0x45   :  { %p826_p2 = por %p825_p1, %p824_p0 }
  0x47   :  { %p827_p3 = pnand %p826_p2, %p820_p13 }
  0x49   :  { %830 = shalt.err (!%p827_p3)
}
  0x4a   :  { %68 = dma.hbm_to_vmem [thread:$0]  %s1035_s4, 512, %s63_s25, [#allocation10], %s866_s1, %s866_s1, %s867_s17  }
  0x4b   :  { %853 = dma.done.wait [#allocation4], 2048  }
  0x4c   :  { %854 = vsyncadd [#allocation4], 4294965248 }
  0x4d   :  { %855 = dma.done.wait [#allocation7], 2304  }
  0x4e   :  { %856 = vsyncadd [#allocation7], 4294964992 }
  0x4f   :  { %857 = dma.done.wait [#allocation10], 512  }
  0x50   :  { %858 = vsyncadd [#allocation10], 4294966784  ;;  %v733_v1 = vld [vmem:[#allocation8] sm:$0xff]   ;;  %v734_v2 = vld [vmem:[#allocation8 + $0x8] sm:$0xff]   ;;  %vm167_vm0 = vcmask 261120   ;;  %vm352_vm1 = vcmask 523264  }
  0x51   :  { %656 = vmatprep.subr.bf16.mxu1 %v733_v1  ;;  %v88_v3 = vld [vmem:[#allocation3] sm:$0xff]  ;;  %v89_v4 = vld [vmem:[#allocation3 + $0x8] sm:$0xff]  ;;  %v90_v8 = vld [vmem:[#allocation3 + $0x10] sm:$0xff]  ;;  %vm870_vm2 = vmmov 0   ;;  %s872_s14 = smov [#allocation11]  }
  0x52   :  { %v104_v5 = vld [vmem:[#allocation6] sm:$0xff]  ;;  %657 = vmatpush3.bf16.msra.mxu1 %v733_v1  ;;  %v105_v6 = vld [vmem:[#allocation6 + $0x8] sm:$0xff]  ;;  %v91_v9 = vld [vmem:[#allocation3 + $0x18] sm:$0xff] }
  0x53   :  { %v120_v7 = vmul.f32 %v104_v5, %v88_v3  ;;  %658 = vmatprep.subr.bf16.mxu1 %v734_v2  ;;  %v121_v10 = vmul.f32 %v105_v6, %v89_v4  ;;  %v106_v11 = vld [vmem:[#allocation6 + $0x10] sm:$0xff]  ;;  %v107_v12 = vld [vmem:[#allocation6 + $0x18] sm:$0xff]  ;;  %v92_v13 = vld [vmem:[#allocation3 + $0x20] sm:$0xff] }
  0x54   :  { %v122_v14 = vmul.f32 %v106_v11, %v90_v8  ;;  %v123_v15 = vmul.f32 %v107_v12, %v91_v9  ;;  %v93_v16 = vld [vmem:[#allocation3 + $0x28] sm:$0xff]  ;;  %v108_v17 = vld [vmem:[#allocation6 + $0x20] sm:$0xff]  ;;  %v94_v22 = vld [vmem:[#allocation3 + $0x30] sm:$0xff] }
  0x55   :  { %v109_v18 = vld [vmem:[#allocation6 + $0x28] sm:$0xff]  ;;  %v136_v19 = vpack.c.bf16 %v121_v10, %v120_v7  ;;  %v124_v20 = vmul.f32 %v108_v17, %v92_v13  ;;  %v95_v23 = vld [vmem:[#allocation3 + $0x38] sm:$0xff]  ;;  %v110_v25 = vld [vmem:[#allocation6 + $0x30] sm:$0xff] }
  0x56   :  { %v125_v21 = vmul.f32 %v109_v18, %v93_v16  ;;  %659 = vmatpush3.bf16.msra.mxu1 %v734_v2  ;;  %v137_v24 = vpack.c.bf16 %v123_v15, %v122_v14  ;;  %v111_v26 = vld [vmem:[#allocation6 + $0x38] sm:$0xff]  ;;  %v96_v27 = vld [vmem:[#allocation3 + $0x40] sm:$0xff]  ;;  %v97_v29 = vld [vmem:[#allocation3 + $0x48] sm:$0xff]  ;;  %v126_v32 = vmul.f32 %v110_v25, %v94_v22 }
  0x57   :  { %660 = vmatprep.mubr.msk.bf16.mxu1 %vm167_vm0, %v136_v19  ;;  %v112_v30 = vld [vmem:[#allocation6 + $0x40] sm:$0xff]  ;;  %v113_v31 = vld [vmem:[#allocation6 + $0x48] sm:$0xff]  ;;  %v127_v33 = vmul.f32 %v111_v26, %v95_v23  ;;  %v98_v36 = vld [vmem:[#allocation3 + $0x50] sm:$0xff] }
  0x58   :  { %v138_v28 = vpack.c.bf16 %v125_v21, %v124_v20  ;;  %v128_v34 = vmul.f32 %v112_v30, %v96_v27  ;;  %v129_v35 = vmul.f32 %v113_v31, %v97_v29  ;;  %v99_v37 = vld [vmem:[#allocation3 + $0x58] sm:$0xff]  ;;  %v114_v38 = vld [vmem:[#allocation6 + $0x50] sm:$0xff]  ;;  %v100_v42 = vld [vmem:[#allocation3 + $0x60] sm:$0xff] }
  0x59   :  { %661 = vmatmul.mubr.msk.bf16.vlgmr.msra.gmra.mrb[0].mxu1 %vm167_vm0, %v137_v24  ;;  %v115_v39 = vld [vmem:[#allocation6 + $0x58] sm:$0xff]  ;;  %v735_v40 = vld [vmem:[#allocation9] sm:$0xff]   ;;  %v139_v41 = vpack.c.bf16 %v127_v33, %v126_v32  ;;  %v101_v45 = vld [vmem:[#allocation3 + $0x68] sm:$0xff]  ;;  %v130_v49 = vmul.f32 %v114_v38, %v98_v36 }
  0x5a   :  { %664 = vmatprep.mubr.msk.bf16.mxu1 %vm167_vm0, %v138_v28  ;;  %v736_v43 = vld [vmem:[#allocation9 + $0x8] sm:$0xff]   ;;  %v140_v44 = vpack.c.bf16 %v129_v35, %v128_v34  ;;  %676 = vmatprep.subr.bf16.mxu1 %v735_v40  ;;  %v116_v46 = vld [vmem:[#allocation6 + $0x60] sm:$0xff]  ;;  %v117_v47 = vld [vmem:[#allocation6 + $0x68] sm:$0xff]  ;;  %v131_v50 = vmul.f32 %v115_v39, %v99_v37 }
  0x5b   :  { %677 = vmatpush3.bf16.msra.mxu1 %v735_v40  ;;  %v737_v48 = vld [vmem:[#allocation9 + $0x10] sm:$0xff]   ;;  %v132_v51 = vmul.f32 %v116_v46, %v100_v42  ;;  %v133_v52 = vmul.f32 %v117_v47, %v101_v45  ;;  %v102_v54 = vld [vmem:[#allocation3 + $0x70] sm:$0xff]  ;;  %v103_v56 = vld [vmem:[#allocation3 + $0x78] sm:$0xff] }
  0x5c   :  { %678 = vmatprep.subr.bf16.mxu1 %v736_v43  ;;  %v141_v53 = vpack.c.bf16 %v131_v50, %v130_v49  ;;  %v118_v57 = vld [vmem:[#allocation6 + $0x70] sm:$0xff]  ;;  %v119_v58 = vld [vmem:[#allocation6 + $0x78] sm:$0xff]  ;;  %v738_v62 = vld [vmem:[#allocation9 + $0x18] sm:$0xff]  }
  0x5d   :  { %v142_v55 = vpack.c.bf16 %v133_v52, %v132_v51  ;;  %v134_v59 = vmul.f32 %v118_v57, %v102_v54  ;;  %v135_v60 = vmul.f32 %v119_v58, %v103_v56  ;;  %v600_v63 = vld [vmem:[%s1034_s3] ss:$0 sm:$0xff]  ;;  %v869_v56 = vmov 0.0  }
  0x5e   :  { %700 = vmatprep.subr.bf16.mxu0 %v869_v56  ;;  %716 = vmatprep.mubr.msk.bf16.mxu0 %vm870_vm2, %v869_v56  ;;  %v566_v57 = vld [vmem:[#allocation2] sm:$0x1]  ;;  %v871_v58 = vmov 0  }
  0x5f   :  { %679 = vmatpush3.bf16.msra.mxu1 %v736_v43  ;;  %v143_v61 = vpack.c.bf16 %v135_v60, %v134_v59  ;;  %732 = vset.pattern.permute.xlu0 %v871_v58  ;;  %v611_v59 = vld [vmem:[%s1036_s5] ss:$0 sm:$0xff] }
  0x60   :  { %680 = vmatprep.subr.bf16.mxu1 %v737_v48  ;;  %569 = vperm.xlu0 %732, %v566_v57  }
  0x61   :  { %665 = vmatmul.mubr.msk.bf16.gmra.mrb[4].mxu1 %vm167_vm0, %v139_v41 }
  0x62   :  { %668 = vmatprep.mubr.msk.bf16.mxu1 %vm167_vm0, %v140_v44 }
  0x63   :  { %681 = vmatpush3.bf16.msra.mxu1 %v737_v48 }
  0x64   :  { %682 = vmatprep.subr.bf16.mxu1 %v738_v62 }
  0x67   :  { %683 = vmatpush3.bf16.msra.mxu1 %v738_v62 }
  0x69   :  { %669 = vmatmul.mubr.msk.bf16.gmra.mrb[8].mxu1 %vm167_vm0, %v141_v53 }
  0x6a   :  { %672 = vmatprep.mubr.msk.bf16.mxu1 %vm167_vm0, %v142_v55 }
  0x71   :  { %673 = vmatmul.mubr.msk.bf16.gmra.mrb[12].mxu1 %vm167_vm0, %v143_v61 }
 0x12c   :  { %v662_v0 = vpop.f32.mrb[0].mxu1 }
 0x12d   :  { %v235_v1 = vadd.f32 %v662_v0, %v600_v63  ;;  %v226_v2 = vpop.f32.mrb[1].mxu1 }
 0x12e   :  { %v227_v3 = vadd.f32 %v600_v63, %v226_v2  ;;  %v663_v4 = vpop.f32.mrb[2].mxu1 }
 0x12f   :  { %v238_v5 = vadd.f32 %v663_v4, %v600_v63  ;;  %v229_v6 = vpop.f32.mrb[3].mxu1  ;;  %v291_v8 = vmax.f32 %v235_v1, 0.0 }
 0x130   :  { %v230_v7 = vadd.f32 %v600_v63, %v229_v6  ;;  %v289_v10 = vmax.f32 %v227_v3, 0.0 }
 0x131   :  { %v292_v9 = vmax.f32 %v238_v5, 0.0 }
 0x132   :  { %v290_v11 = vmax.f32 %v230_v7, 0.0 }
 0x133   :  { %v306_v12 = vpack.c.bf16 %v292_v9, %v291_v8 }
 0x134   :  { %v305_v13 = vpack.c.bf16 %v290_v11, %v289_v10  ;;  %v666_v14 = vpop.f32.mrb[4].mxu1 }
 0x135   :  { %v251_v15 = vadd.f32 %v666_v14, %v600_v63  ;;  %v242_v16 = vpop.f32.mrb[5].mxu1 }
 0x136   :  { %v243_v17 = vadd.f32 %v600_v63, %v242_v16  ;;  %684 = vmatprep.mubr.msk.bf16.mxu1 %vm352_vm1, %v305_v13  ;;  %v667_v18 = vpop.f32.mrb[6].mxu1 }
 0x137   :  { %v295_v19 = vmax.f32 %v251_v15, 0.0  ;;  %v254_v20 = vadd.f32 %v667_v18, %v600_v63  ;;  %685 = vmatmul.mubr.msk.bf16.vlgmr.msra.gmra.mrb[16].mxu1 %vm352_vm1, %v306_v12  ;;  %v245_v21 = vpop.f32.mrb[7].mxu1 }
 0x138   :  { %v293_v22 = vmax.f32 %v243_v17, 0.0  ;;  %v246_v23 = vadd.f32 %v600_v63, %v245_v21 }
 0x139   :  { %v296_v24 = vmax.f32 %v254_v20, 0.0 }
 0x13a   :  { %v294_v25 = vmax.f32 %v246_v23, 0.0 }
 0x13b   :  { %v308_v26 = vpack.c.bf16 %v296_v24, %v295_v19 }
 0x13c   :  { %v307_v27 = vpack.c.bf16 %v294_v25, %v293_v22  ;;  %v670_v28 = vpop.f32.mrb[8].mxu1 }
 0x13d   :  { %v267_v29 = vadd.f32 %v670_v28, %v600_v63  ;;  %v258_v30 = vpop.f32.mrb[9].mxu1 }
 0x13e   :  { %688 = vmatprep.mubr.msk.bf16.mxu1 %vm352_vm1, %v307_v27  ;;  %v259_v31 = vadd.f32 %v600_v63, %v258_v30  ;;  %v671_v32 = vpop.f32.mrb[10].mxu1 }
 0x13f   :  { %689 = vmatmul.mubr.msk.bf16.gmra.mrb[20].mxu1 %vm352_vm1, %v308_v26  ;;  %v299_v33 = vmax.f32 %v267_v29, 0.0  ;;  %v270_v34 = vadd.f32 %v671_v32, %v600_v63  ;;  %v261_v35 = vpop.f32.mrb[11].mxu1 }
 0x140   :  { %v297_v36 = vmax.f32 %v259_v31, 0.0  ;;  %v262_v37 = vadd.f32 %v600_v63, %v261_v35 }
 0x141   :  { %v300_v38 = vmax.f32 %v270_v34, 0.0 }
 0x142   :  { %v298_v39 = vmax.f32 %v262_v37, 0.0 }
 0x143   :  { %v310_v40 = vpack.c.bf16 %v300_v38, %v299_v33 }
 0x144   :  { %v309_v41 = vpack.c.bf16 %v298_v39, %v297_v36  ;;  %v674_v42 = vpop.f32.mrb[12].mxu1 }
 0x145   :  { %v283_v43 = vadd.f32 %v674_v42, %v600_v63  ;;  %v274_v44 = vpop.f32.mrb[13].mxu1 }
 0x146   :  { %692 = vmatprep.mubr.msk.bf16.mxu1 %vm352_vm1, %v309_v41  ;;  %v275_v45 = vadd.f32 %v600_v63, %v274_v44  ;;  %v675_v46 = vpop.f32.mrb[14].mxu1 }
 0x147   :  { %693 = vmatmul.mubr.msk.bf16.gmra.mrb[24].mxu1 %vm352_vm1, %v310_v40  ;;  %v303_v47 = vmax.f32 %v283_v43, 0.0  ;;  %v286_v48 = vadd.f32 %v675_v46, %v600_v63  ;;  %v277_v49 = vpop.f32.mrb[15].mxu1 }
 0x148   :  { %v301_v50 = vmax.f32 %v275_v45, 0.0  ;;  %v278_v51 = vadd.f32 %v600_v63, %v277_v49 }
 0x149   :  { %v304_v52 = vmax.f32 %v286_v48, 0.0 }
 0x14a   :  { %v302_v53 = vmax.f32 %v278_v51, 0.0 }
 0x14b   :  { %v312_v54 = vpack.c.bf16 %v304_v52, %v303_v47 }
 0x14c   :  { %v311_v55 = vpack.c.bf16 %v302_v53, %v301_v50 }
 0x14e   :  { %696 = vmatprep.mubr.msk.bf16.mxu1 %vm352_vm1, %v311_v55 }
 0x14f   :  { %697 = vmatmul.mubr.msk.bf16.gmra.mrb[28].mxu1 %vm352_vm1, %v312_v54 }
 0x20a   :  { %v686_v60 = vpop.f32.mrb[16].mxu1 }
 0x20b   :  { %v420_v61 = vadd.f32 %v686_v60, %v611_v59  ;;  %v411_v62 = vpop.f32.mrb[17].mxu1 }
 0x20c   :  { %v412_v63 = vadd.f32 %v611_v59, %v411_v62  ;;  %v687_v0 = vpop.f32.mrb[18].mxu1  ;;  %v572_v62 = vlaneseq }
 0x20d   :  { %v423_v1 = vadd.f32 %v687_v0, %v611_v59  ;;  %v414_v2 = vpop.f32.mrb[19].mxu1  ;;  %v476_v4 = vmax.f32 %v420_v61, 0.0  ;;  %v498_v61 = vld [vmem:[%s1037_s6] sm:$0xf]  ;;  %s589_s6 = sshll.u32 %s872_s14, 4  ;;  %s590_s6 = int_to_ptr.vmem [resolvable:$true] %s589_s6 }
 0x20e   :  { %v415_v3 = vadd.f32 %v611_v59, %v414_v2  ;;  %v474_v6 = vmax.f32 %v412_v63, 0.0  ;;  %v573_v63 = vshrl.u32 %v572_v62, 7  ;;  %s831_s15 = scalar_lea.vmem %s590_s6, 16  ;;  %s835_s7 = scalar_lea.vmem %s590_s6, 32 }
 0x20f   :  { %v477_v5 = vmax.f32 %v423_v1, 0.0  ;;  %v570_v1 = vpop.permute.xlu0 %569  ;;  %p832_p4 = scmp.ne.s32.totalorder %s590_s6, %s831_s15  ;;  %p836_p5 = scmp.lt.s32.totalorder %s590_s6, %s590_s6 }
 0x210   :  { %v475_v7 = vmax.f32 %v415_v3, 0.0  ;;  %v574_v0 = vsub.s32 0, %v573_v63  ;;  %p837_p6 = scmp.lt.s32.totalorder %s835_s7, %s831_s15 }
 0x211   :  { %v491_v8 = vpack.c.bf16 %v477_v5, %v476_v4 }
 0x212   :  { %v690_v9 = vpop.f32.mrb[20].mxu1  ;;  %v490_v10 = vpack.c.bf16 %v475_v7, %v474_v6  ;;  %v575_v2 = vrot.slane %v570_v1, %v574_v0  ;;  %p838_p7 = por %p837_p6, %p836_p5 }
 0x213   :  { %v436_v11 = vadd.f32 %v690_v9, %v611_v59  ;;  %v427_v12 = vpop.f32.mrb[21].mxu1  ;;  %v506_v28 = vsel %vm352_vm1, %v491_v8, 0 }
 0x214   :  { %v428_v13 = vadd.f32 %v611_v59, %v427_v12  ;;  %v691_v14 = vpop.f32.mrb[22].mxu1  ;;  %v503_v15 = vsel %vm352_vm1, %v490_v10, 0  ;;  %p839_p8 = pnand %p838_p7, %p832_p4 }
 0x215   :  { %v480_v16 = vmax.f32 %v436_v11, 0.0  ;;  %v439_v17 = vadd.f32 %v691_v14, %v611_v59  ;;  %701 = vmatpush3.bf16.xpose.msra.mxu0 %v503_v15  ;;  %v430_v18 = vpop.f32.mrb[23].mxu1 }
 0x216   :  { %v478_v19 = vmax.f32 %v428_v13, 0.0  ;;  %v431_v20 = vadd.f32 %v611_v59, %v430_v18  ;;  %702 = vmatprep.subr.bf16.mxu0 %v869_v56 }
 0x217   :  { %v481_v21 = vmax.f32 %v439_v17, 0.0 }
 0x218   :  { %v479_v22 = vmax.f32 %v431_v20, 0.0 }
 0x219   :  { %v493_v23 = vpack.c.bf16 %v481_v21, %v480_v16 }
 0x21a   :  { %v492_v24 = vpack.c.bf16 %v479_v22, %v478_v19  ;;  %v694_v25 = vpop.f32.mrb[24].mxu1 }
 0x21b   :  { %v452_v26 = vadd.f32 %v694_v25, %v611_v59  ;;  %v443_v27 = vpop.f32.mrb[25].mxu1  ;;  %v512_v55 = vsel %vm352_vm1, %v493_v23, 0 }
 0x21c   :  { %v444_v29 = vadd.f32 %v611_v59, %v443_v27  ;;  %v695_v30 = vpop.f32.mrb[26].mxu1  ;;  %v509_v43 = vsel %vm352_vm1, %v492_v24, 0 }
 0x21d   :  { %703 = vmatpush3.bf16.xpose.msra.mxu0 %v506_v28  ;;  %v484_v31 = vmax.f32 %v452_v26, 0.0  ;;  %v455_v32 = vadd.f32 %v695_v30, %v611_v59  ;;  %v446_v33 = vpop.f32.mrb[27].mxu1 }
 0x21e   :  { %v482_v34 = vmax.f32 %v444_v29, 0.0  ;;  %704 = vmatprep.subr.bf16.mxu0 %v869_v56  ;;  %v447_v35 = vadd.f32 %v611_v59, %v446_v33 }
 0x21f   :  { %v485_v36 = vmax.f32 %v455_v32, 0.0 }
 0x220   :  { %v483_v37 = vmax.f32 %v447_v35, 0.0 }
 0x221   :  { %v495_v38 = vpack.c.bf16 %v485_v36, %v484_v31 }
 0x222   :  { %v494_v39 = vpack.c.bf16 %v483_v37, %v482_v34  ;;  %v698_v40 = vpop.f32.mrb[28].mxu1 }
 0x223   :  { %v468_v41 = vadd.f32 %v698_v40, %v611_v59  ;;  %v459_v42 = vpop.f32.mrb[29].mxu1  ;;  %v518_v58 = vsel %vm352_vm1, %v495_v38, 0 }
 0x224   :  { %v460_v44 = vadd.f32 %v611_v59, %v459_v42  ;;  %v699_v45 = vpop.f32.mrb[30].mxu1  ;;  %v515_v57 = vsel %vm352_vm1, %v494_v39, 0 }
 0x225   :  { %705 = vmatpush3.bf16.xpose.msra.mxu0 %v509_v43  ;;  %v488_v46 = vmax.f32 %v468_v41, 0.0  ;;  %v471_v47 = vadd.f32 %v699_v45, %v611_v59  ;;  %v462_v48 = vpop.f32.mrb[31].mxu1 }
 0x226   :  { %706 = vmatprep.subr.bf16.mxu0 %v869_v56  ;;  %v486_v49 = vmax.f32 %v460_v44, 0.0  ;;  %v463_v50 = vadd.f32 %v611_v59, %v462_v48 }
 0x227   :  { %v489_v51 = vmax.f32 %v471_v47, 0.0 }
 0x228   :  { %v487_v52 = vmax.f32 %v463_v50, 0.0 }
 0x229   :  { %v497_v53 = vpack.c.bf16 %v489_v51, %v488_v46 }
 0x22a   :  { %v496_v54 = vpack.c.bf16 %v487_v52, %v486_v49 }
 0x22b   :  { %v524_v60 = vsel %vm352_vm1, %v497_v53, 0 }
 0x22c   :  { %v521_v59 = vsel %vm352_vm1, %v496_v54, 0 }
 0x22d   :  { %707 = vmatpush3.bf16.xpose.msra.mxu0 %v512_v55 }
 0x22e   :  { %708 = vmatprep.subr.bf16.mxu0 %v869_v56 }
 0x235   :  { %709 = vmatpush3.bf16.xpose.msra.mxu0 %v515_v57 }
 0x236   :  { %710 = vmatprep.subr.bf16.mxu0 %v869_v56 }
 0x23d   :  { %711 = vmatpush3.bf16.xpose.msra.mxu0 %v518_v58 }
 0x23e   :  { %712 = vmatprep.subr.bf16.mxu0 %v869_v56 }
 0x245   :  { %713 = vmatpush3.bf16.xpose.msra.mxu0 %v521_v59 }
 0x246   :  { %714 = vmatprep.subr.bf16.mxu0 %v869_v56 }
 0x24d   :  { %715 = vmatpush3.bf16.xpose.msra.mxu0 %v524_v60 }
 0x254   :  { %717 = vmatmul.mubr.msk.bf16.vlgmr.msra.gmra.mrb[0].mxu0 %vm352_vm1, %v498_v61 }
 0x327   :  { %v560_v3 = vpop.f32.mrb[0].mxu0 }
 0x328   :  { %v576_v4 = vadd.f32 %v575_v2, %v560_v3  ;;  %v718_v5 = vpop.f32.mrb[1].mxu0 }
 0x329   :  { %v563_v6 = vpop.f32.mrb[2].mxu0 }
 0x32a   :  { %v577_v7 = vsub.f32 0.0, %v576_v4  ;;  %v719_v56 = vpop.f32.mrb[3].mxu0 }
 0x32c   :  { %v578_v8 = vmul.f32 1.442695, %v577_v7 }
 0x32e   :  { %739 = vpow2.f32 %v578_v8 }
 0x338   :  { %v740_v9 = vpop.eup %739 }
 0x339   :  { %v580_v10 = vadd.f32 1.0, %v740_v9 }
 0x33b   :  { %741 = vrcp.f32 %v580_v10 }
 0x345   :  { %v742_v11 = vpop.eup %741 }
 0x346   :  { %582 = vst [vmem:[#allocation11] sm:$0x1] %v742_v11 }
 0x347   :  { %842 = shalt.err (!%p839_p8)
}
 0x348   :  { %s843_s20 = scalar_lea.hbm %s1039_s8, 16 }
 0x349   :  { %p844_p9 = scmp.ne.s32.totalorder %s1039_s8, %s843_s20  ;;  %p847_p10 = scmp.lt.u32.totalorder %s843_s20, %s1039_s8 }
 0x34b   :  { %p849_p11 = pnand %p847_p10, %p844_p9 }
 0x34d   :  { %852 = shalt.err (!%p849_p11)
}
 0x34e   :  { %592 = dma.vmem_to_hbm [thread:$0]  %s590_s6, 16, %s1039_s8, [#allocation5]  }
 0x34f   :  { %859 = dma.done.wait [#allocation5], 16  }
 0x350   :  { %860 = vsyncadd [#allocation5], 4294967280 }
 0x351   :  { %596 = vsyncpa [#allocation4], 1 }
 0x352   :  { %597 = vsyncpa [#allocation7], 1 }
 0x353   :  { %598 = vsyncpa [#allocation10], 1 }
 0x354   :  { %599 = vsyncpa [#allocation5], 1 }

</bundles_post_ra>
